<compile_context>
chip_gen: v7x
topology: tpu7x:2x2x1
jax: 0.10.0
libtpu: 0.0.40
codegen_flags: <defaults>
</compile_context>

<pallas_src>
import functools
import math

import jax
import jax.numpy as jnp
from jax import lax
from jax.experimental import pallas as pl
from jax.experimental.pallas import tpu as pltpu

EPS = 1.1920928955078125e-07   # torch.nn.RMSNorm default eps for float32 inputs
NEG_INF = -1e30


# ------------------------------- hardware-aware knobs -------------------------------
@functools.lru_cache(maxsize=None)
def _tpu_vmem_bytes():
    try:
        return int(pltpu.get_tpu_info().vmem_capacity_bytes)
    except Exception:
        return 64 * 1024 * 1024        # conservative fallback (v7x-sized)


def _vmem_limit_bytes():
    cap = _tpu_vmem_bytes()
    # leave 1/8 headroom for compiler scratch / semaphores:
    #   ~112 MiB on v5e/v6e (128 MiB physical), ~56 MiB on v7x (64 MiB per TC).
    return max(32 * 1024 * 1024, min(cap - cap // 8, 120 * 1024 * 1024))


def _default_row_tile():
    # 512-row tiles on 128-MiB-VMEM parts (v5e/v6e), 256 on v7x.
    return 512 if _tpu_vmem_bytes() >= 100 * 1024 * 1024 else 256


def _cparams(*sems):
    return pltpu.CompilerParams(dimension_semantics=sems,
                                vmem_limit_bytes=_vmem_limit_bytes())


def _probe_kernel(x_ref, o_ref):
    o_ref[...] = x_ref[...]


@functools.lru_cache(maxsize=None)
def _single_buffer_ok():
    """Feature-probe pipeline_mode=pl.Buffered(1) (single-buffered constant operands)."""
    try:
        spec = pl.BlockSpec((8, 128), lambda i: (0, 0), pipeline_mode=pl.Buffered(1))
        fn = pl.pallas_call(
            _probe_kernel,
            out_shape=jax.ShapeDtypeStruct((8, 128), jnp.float32),
            grid=(2,),
            in_specs=[spec],
            out_specs=pl.BlockSpec((8, 128), lambda i: (0, 0)),
        )
        jax.block_until_ready(fn(jnp.zeros((8, 128), jnp.float32)))
        return True
    except Exception:
        return False


def _spec(shape, index_map, *, single=False):
    """BlockSpec; grid-invariant operands are single-buffered when supported."""
    if single and _single_buffer_ok():
        return pl.BlockSpec(shape, index_map, pipeline_mode=pl.Buffered(1))
    return pl.BlockSpec(shape, index_map)


# ------------------------------------ helpers ----------------------------------------
def _round_up(x, m):
    return (x + m - 1) // m * m


def _row_tile(m, pref=None):
    """(padded_rows, row_tile); tiles are multiples of 16 (bf16 sublane packing)."""
    if pref is None:
        pref = _default_row_tile()
    if m >= pref:
        return _round_up(m, pref), pref
    t = _round_up(m, 16)
    return t, t


def _seq_tile(n, batch=1):
    cands = [c for c in (256, 128) if n % c == 0]
    if not cands:
        return n
    if batch == 1:          # v7x: keep nq even so both TensorCores stay busy
        for c in cands:
            if (n // c) % 2 == 0:
                return c
    return cands[0]


def _col_tile(v, pref=512):
    if v <= 1024:
        return v
    for cand in (pref, 256, 128):
        if v % cand == 0:
            return cand
    return v


def _hidden_tile(h):
    if h <= 2048:
        return h
    for cand in (2048, 1024, 512):
        if h % cand == 0:
            return cand
    return h


def _rmsnorm(x, g):
    # x: f32 [rows, D], g: f32 [1, D]
    ms = jnp.mean(jnp.square(x), axis=-1, keepdims=True)
    return x * lax.rsqrt(ms + EPS) * g


# ----------------------------------- GRN kernel --------------------------------------
def grn_kernel(tok_ref, g_ref, w_ref, bias_ref, out_ref):
    # tok: [Y, tm, D] bf16   g: [1, D] f32   w: [D, O] bf16   bias: [O, Y, D] f32
    # out: [O, tm, D] bf16
    Y = tok_ref.shape[0]
    O = w_ref.shape[1]
    g = g_ref[...]
    w = w_ref[...]
    bias = bias_ref[...]
    # Pass 1: gate activations (one RMSNorm + small matmul per depth layer).
    gates = []
    for y in range(Y):
        t = tok_ref[y].astype(jnp.float32)
        normed = _rmsnorm(t, g).astype(jnp.bfloat16)
        gates.append(jnp.maximum(
            jnp.dot(normed, w, preferred_element_type=jnp.float32), 0.0))     # [tm, O]
    # Pass 2: per-output register accumulation; a single store per output
    # (no per-(y,o) VMEM read-modify-write).
    for o in range(O):
        acc = jnp.zeros(out_ref.shape[1:], jnp.float32)
        for y in range(Y):
            t = tok_ref[y].astype(jnp.float32)
            acc = acc + t * (gates[y][:, o:o + 1] + bias[o, y][None, :])
        out_ref[o] = acc.astype(out_ref.dtype)


def grn(stacked, g, w, bias):
    # stacked: [Y, B, N, D] -> [O, B, N, D] (bf16)
    Y, B, N, D = stacked.shape
    O = w.shape[1]
    M = B * N
    Mp, tm = _row_tile(M, pref=128)    # 128-row tile keeps the accumulator small
    toks = stacked.reshape(Y, M, D).astype(jnp.bfloat16)
    if Mp != M:
        toks = jnp.pad(toks, ((0, 0), (0, Mp - M), (0, 0)))
    out = pl.pallas_call(
        grn_kernel,
        out_shape=jax.ShapeDtypeStruct((O, Mp, D), jnp.bfloat16),
        grid=(Mp // tm,),
        in_specs=[
            pl.BlockSpec((Y, tm, D), lambda i: (0, i, 0)),
            _spec((1, D), lambda i: (0, 0), single=True),
            _spec((D, O), lambda i: (0, 0), single=True),
            _spec((O, Y, D), lambda i: (0, 0, 0), single=True),
        ],
        out_specs=pl.BlockSpec((O, tm, D), lambda i: (0, i, 0)),
        compiler_params=_cparams("parallel"),
    )(toks, g.reshape(1, D).astype(jnp.float32), w.astype(jnp.bfloat16),
      bias.astype(jnp.float32))
    return out[:, :M].reshape(O, B, N, D)


# ----------------------------- QKV projection kernel ---------------------------------
def qkv_project_kernel(dim_head, qin_ref, kin_ref, vin_ref, gq_ref, gk_ref, gv_ref,
                       wq_ref, wk_ref, wv_ref, cos_ref, sin_ref,
                       qo_ref, ko_ref, vo_ref):
    # *_in: [tn, D] bf16   g*: [1, D] f32
    # w*: [D, Hd] bf16 (wq/wk column-de-interleaved per head; wq pre-scaled by 1/sqrt(dh))
    # cos/sin: [tn, dh] f32 (de-interleaved)   outs: [tn, Hd] bf16
    Hd = wq_ref.shape[1]
    heads = Hd // dim_head
    dh2 = dim_head // 2
    q_n = _rmsnorm(qin_ref[...].astype(jnp.float32), gq_ref[...]).astype(jnp.bfloat16)
    k_n = _rmsnorm(kin_ref[...].astype(jnp.float32), gk_ref[...]).astype(jnp.bfloat16)
    v_n = _rmsnorm(vin_ref[...].astype(jnp.float32), gv_ref[...]).astype(jnp.bfloat16)
    q = jnp.dot(q_n, wq_ref[...], preferred_element_type=jnp.float32)       # [tn, Hd]
    k = jnp.dot(k_n, wk_ref[...], preferred_element_type=jnp.float32)
    v = jnp.dot(v_n, wv_ref[...], preferred_element_type=jnp.float32)
    cos = cos_ref[...]
    sin = sin_ref[...]

    def rope(x):   # de-interleaved basis: rotate_half == concat(-x2, x1)
        x1 = x[:, :dh2]
        x2 = x[:, dh2:]
        return x * cos + jnp.concatenate([-x2, x1], axis=-1) * sin

    for h in range(heads):                                  # static unroll (heads small)
        sl = slice(h * dim_head, (h + 1) * dim_head)
        qo_ref[:, sl] = rope(q[:, sl]).astype(qo_ref.dtype)
        ko_ref[:, sl] = rope(k[:, sl]).astype(ko_ref.dtype)
    vo_ref[...] = v.astype(vo_ref.dtype)


def qkv_project(q_in, k_in, v_in, blk, cos, sin, perm, dim_head):
    B, N, D = q_in.shape
    Hd = blk['wq'].shape[1]
    tn = _seq_tile(N, B)
    bf = jnp.bfloat16
    scale = 1.0 / math.sqrt(dim_head)
    kern = functools.partial(qkv_project_kernel, dim_head)
    const2 = lambda b, i: (0, 0)
    act_spec = pl.BlockSpec((None, tn, D), lambda b, i: (b, i, 0))
    rot_spec = pl.BlockSpec((tn, dim_head), lambda b, i: (i, 0))
    out_spec = pl.BlockSpec((None, tn, Hd), lambda b, i: (b, i, 0))
    return pl.pallas_call(
        kern,
        out_shape=(jax.ShapeDtypeStruct((B, N, Hd), bf),
                   jax.ShapeDtypeStruct((B, N, Hd), bf),
                   jax.ShapeDtypeStruct((B, N, Hd), bf)),
        grid=(B, N // tn),
        in_specs=[act_spec, act_spec, act_spec,
                  _spec((1, D), const2, single=True),
                  _spec((1, D), const2, single=True),
                  _spec((1, D), const2, single=True),
                  _spec((D, Hd), const2, single=True),
                  _spec((D, Hd), const2, single=True),
                  _spec((D, Hd), const2, single=True),
                  rot_spec, rot_spec],
        out_specs=(out_spec, out_spec, out_spec),
        compiler_params=_cparams("parallel", "parallel"),
    )(q_in.astype(bf), k_in.astype(bf), v_in.astype(bf),
      blk['gq'].reshape(1, D).astype(jnp.float32),
      blk['gk'].reshape(1, D).astype(jnp.float32),
      blk['gv'].reshape(1, D).astype(jnp.float32),
      (blk['wq'][:, perm] * scale).astype(bf),     # 1/sqrt(dh) folded into wq
      blk['wk'][:, perm].astype(bf),
      blk['wv'].astype(bf),
      cos, sin)


# ---------------------------- flash attention kernel ---------------------------------
def attention_kernel(dim_head, q_ref, k_ref, v_ref, wo_ref, out_ref,
                     m_ref, l_ref, acc_ref):
    # q: [tq, Hd] bf16 (normed, projected, RoPE'd, pre-scaled)   k/v: [tk, Hd] bf16
    # wo: [Hd, D] bf16   out: [tq, D] bf16
    # scratch: m/l [tq, heads] f32 running max / denom, acc [tq, Hd] f32
    tq = q_ref.shape[0]
    tk = k_ref.shape[0]
    Hd = q_ref.shape[1]
    heads = Hd // dim_head
    ki = pl.program_id(2)
    q_start = pl.program_id(1) * tq
    k_start = ki * tk

    @pl.when(ki == 0)
    def _():
        m_ref[...] = jnp.full_like(m_ref, NEG_INF)
        l_ref[...] = jnp.zeros_like(l_ref)
        acc_ref[...] = jnp.zeros_like(acc_ref)

    # Skip KV tiles that lie entirely above the causal diagonal.
    @pl.when(k_start <= q_start + (tq - 1))
    def _():
        rows = q_start + lax.broadcasted_iota(jnp.int32, (tq, tk), 0)
        cols = k_start + lax.broadcasted_iota(jnp.int32, (tq, tk), 1)
        valid = cols <= rows                       # in-kernel causal mask (no HBM mask)
        q = q_ref[...]
        k = k_ref[...]
        v = v_ref[...]
        # TODO(synk): lax.fori_loop over heads (pl.ds slices) once heads > ~4, and
        #             head-grouping so per-head slabs cover full 128-lane multiples.
        for h in range(heads):                               # static unroll over heads
            sl = slice(h * dim_head, (h + 1) * dim_head)
            s = lax.dot_general(q[:, sl], k[:, sl], (((1,), (1,)), ((), ())),
                                preferred_element_type=jnp.float32)          # [tq, tk]
            s = jnp.where(valid, s, NEG_INF)
            m_prev = m_ref[:, h:h + 1]
            m_new = jnp.maximum(m_prev, jnp.max(s, axis=-1, keepdims=True))
            alpha = jnp.exp(m_prev - m_new)
            p = jnp.where(valid, jnp.exp(s - m_new), 0.0)
            l_ref[:, h:h + 1] = alpha * l_ref[:, h:h + 1] + jnp.sum(
                p, axis=-1, keepdims=True)
            acc_ref[:, sl] = alpha * acc_ref[:, sl] + jnp.dot(
                p.astype(jnp.bfloat16), v[:, sl], preferred_element_type=jnp.float32)
            m_ref[:, h:h + 1] = m_new

    @pl.when(ki == pl.num_programs(2) - 1)
    def _():
        for h in range(heads):
            sl = slice(h * dim_head, (h + 1) * dim_head)
            acc_ref[:, sl] = acc_ref[:, sl] * pl.reciprocal(l_ref[:, h:h + 1],
                                                            approx=True)
        o = acc_ref[...].astype(jnp.bfloat16)
        out_ref[...] = jnp.dot(o, wo_ref[...],
                               preferred_element_type=jnp.float32).astype(out_ref.dtype)


def flash_attention(q_r, k_r, v_p, wo, dim_head):
    B, N, Hd = q_r.shape
    D = wo.shape[1]
    heads = Hd // dim_head
    tq = _seq_tile(N, B)
    tk = tq
    kern = functools.partial(attention_kernel, dim_head)
    return pl.pallas_call(
        kern,
        out_shape=jax.ShapeDtypeStruct((B, N, D), jnp.bfloat16),
        grid=(B, N // tq, N // tk),
        in_specs=[
            pl.BlockSpec((None, tq, Hd), lambda b, i, j: (b, i, 0)),
            pl.BlockSpec((None, tk, Hd), lambda b, i, j: (b, j, 0)),
            pl.BlockSpec((None, tk, Hd), lambda b, i, j: (b, j, 0)),
            _spec((Hd, D), lambda b, i, j: (0, 0), single=True),
        ],
        out_specs=pl.BlockSpec((None, tq, D), lambda b, i, j: (b, i, 0)),
        scratch_shapes=[pltpu.VMEM((tq, heads), jnp.float32),
                        pltpu.VMEM((tq, heads), jnp.float32),
                        pltpu.VMEM((tq, Hd), jnp.float32)],
        compiler_params=_cparams("parallel", "parallel", "arbitrary"),
    )(q_r, k_r, v_p, wo.astype(jnp.bfloat16))


def attention(q_in, k_in, v_in, blk, cos, sin, perm, dim_head):
    q_r, k_r, v_p = qkv_project(q_in, k_in, v_in, blk, cos, sin, perm, dim_head)
    return flash_attention(q_r, k_r, v_p, blk['wo'], dim_head)


# ------------------------------- FeedForward kernel ----------------------------------
def ff_kernel(attn_ref, res_ref, g_ref, w1_ref, b1_ref, w2_ref, b2_ref, out_ref,
              normed_ref, acc_ref):
    # attn/res: [tm, D] bf16   g: [1, D] f32   w1: [D, th] bf16   b1: [1, th] f32
    # w2: [th, D] bf16   b2: [1, D] f32   out: [tm, D] bf16
    # scratch: normed [tm, D] bf16, acc [tm, D] f32
    j = pl.program_id(1)

    @pl.when(j == 0)
    def _():
        x = attn_ref[...].astype(jnp.float32) + res_ref[...].astype(jnp.float32)
        normed_ref[...] = _rmsnorm(x, g_ref[...]).astype(jnp.bfloat16)
        acc_ref[...] = jnp.zeros_like(acc_ref)

    h = jnp.dot(normed_ref[...], w1_ref[...],
                preferred_element_type=jnp.float32) + b1_ref[...]
    # tanh-approx GELU (tanh lowers to the EUP slot).
    # TODO(synk): exact erf GELU if bit-parity with torch nn.GELU() is required.
    h = 0.5 * h * (1.0 + jnp.tanh(jnp.float32(0.7978845608028654)
                                  * (h + jnp.float32(0.044715) * h * h * h)))
    acc_ref[...] += jnp.dot(h.astype(jnp.bfloat16), w2_ref[...],
                            preferred_element_type=jnp.float32)

    @pl.when(j == pl.num_programs(1) - 1)
    def _():
        # DCABlock output: ff_out + attn_out (matches the PyTorch spec; the residual
        # contributes only through the pre-norm input).
        out_ref[...] = (acc_ref[...] + b2_ref[...]
                        + attn_ref[...].astype(jnp.float32)).astype(out_ref.dtype)


def feed_forward_block(attn_out, residual, g, w1, b1, w2, b2):
    B, N, D = attn_out.shape
    H = w1.shape[1]
    M = B * N
    Mp, tm = _row_tile(M)
    th = _hidden_tile(H)
    bf = jnp.bfloat16
    a2 = attn_out.reshape(M, D).astype(bf)
    r2 = residual.reshape(M, D).astype(bf)
    if Mp != M:
        a2 = jnp.pad(a2, ((0, Mp - M), (0, 0)))
        r2 = jnp.pad(r2, ((0, Mp - M), (0, 0)))
    out = pl.pallas_call(
        ff_kernel,
        out_shape=jax.ShapeDtypeStruct((Mp, D), bf),
        grid=(Mp // tm, H // th),
        in_specs=[
            pl.BlockSpec((tm, D), lambda i, j: (i, 0)),
            pl.BlockSpec((tm, D), lambda i, j: (i, 0)),
            _spec((1, D), lambda i, j: (0, 0), single=True),
            pl.BlockSpec((D, th), lambda i, j: (0, j)),
            pl.BlockSpec((1, th), lambda i, j: (0, j)),
            pl.BlockSpec((th, D), lambda i, j: (j, 0)),
            _spec((1, D), lambda i, j: (0, 0), single=True),
        ],
        out_specs=pl.BlockSpec((tm, D), lambda i, j: (i, 0)),
        scratch_shapes=[pltpu.VMEM((tm, D), jnp.bfloat16),
                        pltpu.VMEM((tm, D), jnp.float32)],
        compiler_params=_cparams("parallel", "arbitrary"),
    )(a2, r2, g.reshape(1, D).astype(jnp.float32),
      w1.astype(bf), b1.reshape(1, H).astype(jnp.float32),
      w2.astype(bf), b2.reshape(1, D).astype(jnp.float32))
    return out[:M].reshape(B, N, D)


# --------------------------- final norm + logits kernel -------------------------------
def logits_kernel(x_ref, g_ref, w_ref, out_ref):
    normed = _rmsnorm(x_ref[...].astype(jnp.float32), g_ref[...]).astype(jnp.bfloat16)
    out_ref[...] = jnp.dot(normed, w_ref[...],
                           preferred_element_type=jnp.float32).astype(out_ref.dtype)


def logits_proj(pooled, g, w):
    B, N, D = pooled.shape
    V = w.shape[1]
    M = B * N
    Mp, tm = _row_tile(M)
    tv = _col_tile(V)
    x2 = pooled.reshape(M, D).astype(jnp.bfloat16)
    if Mp != M:
        x2 = jnp.pad(x2, ((0, Mp - M), (0, 0)))
    # vocab axis OUTER: each w_logits tile is read from HBM once; the much smaller
    # activation row tiles re-stream along the inner axis.
    out = pl.pallas_call(
        logits_kernel,
        out_shape=jax.ShapeDtypeStruct((Mp, V), jnp.float32),
        grid=(V // tv, Mp // tm),
        in_specs=[
            pl.BlockSpec((tm, D), lambda j, i: (i, 0)),
            _spec((1, D), lambda j, i: (0, 0), single=True),
            pl.BlockSpec((D, tv), lambda j, i: (0, j)),
        ],
        out_specs=pl.BlockSpec((tm, tv), lambda j, i: (i, j)),
        compiler_params=_cparams("parallel", "parallel"),
    )(x2, g.reshape(1, D).astype(jnp.float32), w.astype(jnp.bfloat16))
    return out[:M].reshape(B, N, V)


# ------------------------------ rotary tables (glue) ----------------------------------
def rotary_tables(n, dh, theta=10000.0):
    # de-interleaved layout: [cos(f0..f_{dh/2-1}) | cos(f0..f_{dh/2-1})], same for sin
    inv_freq = 1.0 / (theta ** (jnp.arange(0, dh, 2, dtype=jnp.float32) / dh))
    t = jnp.arange(n, dtype=jnp.float32)
    ang = t[:, None] * inv_freq[None, :]               # [n, dh/2]
    ang2 = jnp.concatenate([ang, ang], axis=-1)        # [n, dh]
    return jnp.cos(ang2), jnp.sin(ang2)


def deinterleave_perm(heads, dh):
    # per-head column permutation [0,2,4,...,1,3,5,...]; applying it to both wq and wk
    # is a basis change that leaves q.k scores invariant while making rotate_half a
    # simple half-split.
    base = jnp.arange(dh, dtype=jnp.int32).reshape(dh // 2, 2).T.reshape(dh)
    return (jnp.arange(heads, dtype=jnp.int32)[:, None] * dh + base[None, :]).reshape(-1)


# --------------------------------- parameters -----------------------------------------
def init_params(key, num_tokens, dim, depth, past_layers_k, dim_head, heads,
                ff_expansion_factor=4.0):
    keys = iter(jax.random.split(key, 256))
    nrm = lambda shape, scale=0.02: scale * jax.random.normal(next(keys), shape, jnp.float32)
    dim_inner = heads * dim_head
    dim_hidden = int(dim * ff_expansion_factor)
    params = {'token_emb': nrm((num_tokens, dim), 1.0)}
    blocks = []
    for i in range(depth):
        L = min(past_layers_k * 2, i + 1)
        blocks.append({
            'grn_g': jnp.ones((dim,), jnp.float32),
            'grn_w': nrm((dim, 3)),
            'grn_bias': jnp.ones((3, L, dim), jnp.float32),
            'gq': jnp.ones((dim,), jnp.float32),
            'gk': jnp.ones((dim,), jnp.float32),
            'gv': jnp.ones((dim,), jnp.float32),
            'wq': nrm((dim, dim_inner)),
            'wk': nrm((dim, dim_inner)),
            'wv': nrm((dim, dim_inner)),
            'wo': nrm((dim_inner, dim)),
            'pre_ff_g': jnp.ones((dim,), jnp.float32),
            'w1': nrm((dim, dim_hidden)),
            'b1': nrm((dim_hidden,)),
            'w2': nrm((dim_hidden, dim)),
            'b2': nrm((dim,)),
        })
    params['blocks'] = blocks
    Lf = min(past_layers_k * 2, depth + 1)
    params['final_grn_g'] = jnp.ones((dim,), jnp.float32)
    params['final_grn_w'] = nrm((dim, 1))
    params['final_grn_bias'] = jnp.ones((1, Lf, dim), jnp.float32)
    params['final_norm_g'] = jnp.ones((dim,), jnp.float32)
    params['w_logits'] = nrm((dim, num_tokens))
    return params


# --------------------------------- forward pass ---------------------------------------
def dca_gpt_forward(params, ids, *, dim_head, heads, past_layers_k):
    B, N = ids.shape
    tokens = jnp.take(params['token_emb'], ids, axis=0).astype(jnp.bfloat16)  # [B, N, D]
    cos, sin = rotary_tables(N, dim_head)
    perm = deinterleave_perm(heads, dim_head)

    def select_layers(all_toks):
        k = past_layers_k
        if len(all_toks) < 2 * k:
            sel = all_toks
        else:
            sel = list(all_toks[:k]) + list(all_toks[-k:])
        return jnp.stack(sel)                                # [Y, B, N, D]

    all_tokens = [tokens]
    for blk in params['blocks']:
        stacked = select_layers(all_tokens)
        qkv = grn(stacked, blk['grn_g'], blk['grn_w'], blk['grn_bias'])   # [3, B, N, D]
        q_in, k_in, v_in = qkv[0], qkv[1], qkv[2]
        attn_out = attention(q_in, k_in, v_in, blk, cos, sin, perm, dim_head)
        block_out = feed_forward_block(attn_out, q_in, blk['pre_ff_g'],
                                       blk['w1'], blk['b1'], blk['w2'], blk['b2'])
        all_tokens.append(block_out)

    final_stacked = select_layers(all_tokens)
    pooled = grn(final_stacked, params['final_grn_g'], params['final_grn_w'],
                 params['final_grn_bias'])[0]                # num_outputs=1 -> squeeze
    logits = logits_proj(pooled, params['final_norm_g'], params['w_logits'])
    return logits                                            # [B, N, num_tokens] f32
    # TODO(synk): return_loss=True path (cross_entropy over shifted labels) not implemented.


if __name__ == "__main__":
    key = jax.random.PRNGKey(0)
    num_tokens, dim, depth = 64, 32, 4
    heads, dim_head = 2, 16
    past_layers_k = 2
    batch, seq = 2, 8

    pkey, ikey = jax.random.split(key)
    params = init_params(pkey, num_tokens, dim, depth, past_layers_k, dim_head, heads)
    ids = jax.random.randint(ikey, (batch, seq), 0, num_tokens, dtype=jnp.int32)

    logits = dca_gpt_forward(params, ids, dim_head=dim_head, heads=heads,
                             past_layers_k=past_layers_k)
    jax.block_until_ready(logits)
    assert logits.shape == (batch, seq, num_tokens)
    assert bool(jnp.all(jnp.isfinite(logits)))
    print("KERNEL_OK")
</pallas_src>

<mosaic_0001>
module attributes {stable_mosaic.version = 11 : i64} {
  func.func @_probe_kernel(%arg0: i32, %arg1: memref<8x128xf32, #tpu.memory_space<vmem>>, %arg2: memref<8x128xf32, #tpu.memory_space<vmem>>) attributes {dimension_semantics = [#tpu.dimension_semantics<arbitrary>], iteration_bounds = array<i64: 2>, scalar_prefetch = 0 : i64, scratch_operands = 0 : i64, tpu.core_type = #tpu.core_type<tc>, window_params = [{pipeline_mode = #tpu.pipeline_mode<synchronous>, transform_indices = @transform_0, window_bounds = array<i64: 8, 128>}, {pipeline_mode = #tpu.pipeline_mode<synchronous>, transform_indices = @transform_1, window_bounds = array<i64: 8, 128>}]} {
    %c0 = arith.constant 0 : index
    %c0_0 = arith.constant 0 : index
    %0 = vector.load %arg1[%c0, %c0_0] : memref<8x128xf32, #tpu.memory_space<vmem>>, vector<8x128xf32>
    %c0_1 = arith.constant 0 : index
    %c0_2 = arith.constant 0 : index
    %1 = vector.load %arg2[%c0_1, %c0_2] : memref<8x128xf32, #tpu.memory_space<vmem>>, vector<8x128xf32>
    tpu.vector_store %arg2[%c0_1, %c0_2], %0 {strides = array<i32>} : memref<8x128xf32, #tpu.memory_space<vmem>>, vector<8x128xf32>,
    return
  }
  func.func @transform_0(%arg0: i32) -> (i32, i32) {
    %c0_i32 = arith.constant 0 : i32
    %c0_i32_0 = arith.constant 0 : i32
    %c0_i32_1 = arith.constant 0 : i32
    return %c0_i32, %c0_i32_0 : i32, i32
  }
  func.func @transform_1(%arg0: i32) -> (i32, i32) {
    %c0_i32 = arith.constant 0 : i32
    %c0_i32_0 = arith.constant 0 : i32
    %c0_i32_1 = arith.constant 0 : i32
    return %c0_i32, %c0_i32_0 : i32, i32
  }
}

module attributes {stable_mosaic.version = 11 : i64} {
  func.func @grn_kernel(%arg0: i32, %arg1: memref<1x16x32xbf16, #tpu.memory_space<vmem>>, %arg2: memref<1x32xf32, #tpu.memory_space<vmem>>, %arg3: memref<32x3xbf16, #tpu.memory_space<vmem>>, %arg4: memref<3x1x32xf32, #tpu.memory_space<vmem>>, %arg5: memref<3x16x32xbf16, #tpu.memory_space<vmem>>) attributes {dimension_semantics = [#tpu.dimension_semantics<parallel>], iteration_bounds = array<i64: 1>, scalar_prefetch = 0 : i64, scratch_operands = 0 : i64, tpu.core_type = #tpu.core_type<tc>, window_params = [{transform_indices = @transform_0, window_bounds = array<i64: 1, 16, 32>}, {pipeline_mode = #tpu.pipeline_mode<synchronous>, transform_indices = @transform_1, window_bounds = array<i64: 1, 32>}, {pipeline_mode = #tpu.pipeline_mode<synchronous>, transform_indices = @transform_2, window_bounds = array<i64: 32, 3>}, {pipeline_mode = #tpu.pipeline_mode<synchronous>, transform_indices = @transform_3, window_bounds = array<i64: 3, 1, 32>}, {transform_indices = @transform_4, window_bounds = array<i64: 3, 16, 32>}]} {
    %c0 = arith.constant 0 : index
    %c0_0 = arith.constant 0 : index
    %0 = vector.load %arg2[%c0, %c0_0] : memref<1x32xf32, #tpu.memory_space<vmem>>, vector<1x32xf32>
    %c0_1 = arith.constant 0 : index
    %c0_2 = arith.constant 0 : index
    %1 = vector.load %arg3[%c0_1, %c0_2] : memref<32x3xbf16, #tpu.memory_space<vmem>>, vector<32x3xbf16>
    %c0_3 = arith.constant 0 : index
    %c0_4 = arith.constant 0 : index
    %c0_5 = arith.constant 0 : index
    %2 = vector.load %arg4[%c0_3, %c0_4, %c0_5] : memref<3x1x32xf32, #tpu.memory_space<vmem>>, vector<3x1x32xf32>
    %c0_6 = arith.constant 0 : index
    %c0_7 = arith.constant 0 : index
    %c0_8 = arith.constant 0 : index
    %3 = vector.load %arg1[%c0_6, %c0_7, %c0_8] : memref<1x16x32xbf16, #tpu.memory_space<vmem>>, vector<1x16x32xbf16>
    %4 = vector.shape_cast %3 : vector<1x16x32xbf16> to vector<16x32xbf16>
    %5 = arith.extf %4 : vector<16x32xbf16> to vector<16x32xf32>
    %6 = arith.mulf %5, %5 : vector<16x32xf32>
    %cst = arith.constant dense<0.000000e+00> : vector<16xf32>
    %7 = vector.multi_reduction <add>, %6, %cst [1] : vector<16x32xf32> to vector<16xf32>
    %8 = vector.shape_cast %7 : vector<16xf32> to vector<16x1xf32>
    %cst_9 = arith.constant 3.200000e+01 : f32
    %9 = vector.broadcast %cst_9 : f32 to vector<16x1xf32>
    %10 = arith.divf %8, %9 : vector<16x1xf32>
    %cst_10 = arith.constant 1.1920929E-7 : f32
    %11 = vector.broadcast %cst_10 : f32 to vector<16x1xf32>
    %12 = arith.addf %10, %11 : vector<16x1xf32>
    %13 = math.rsqrt %12 : vector<16x1xf32>
    %14 = vector.broadcast %13 : vector<16x1xf32> to vector<16x32xf32>
    %15 = arith.mulf %5, %14 : vector<16x32xf32>
    %16 = vector.broadcast %0 : vector<1x32xf32> to vector<16x32xf32>
    %17 = arith.mulf %15, %16 : vector<16x32xf32>
    %18 = arith.truncf %17 : vector<16x32xf32> to vector<16x32xbf16>
    %cst_11 = arith.constant dense<0.000000e+00> : vector<16x3xf32>
    %19 = tpu.matmul %18, %1, %cst_11 {dimension_numbers = #tpu.dot_dimension_numbers<[1], [0], [0], [1], [0, 0, 1, 1], [], []>} : vector<16x32xbf16>, vector<32x3xbf16>, vector<16x3xf32> -> vector<16x3xf32>
    %cst_12 = arith.constant 0.000000e+00 : f32
    %20 = vector.broadcast %cst_12 : f32 to vector<16x3xf32>
    %21 = arith.maximumf %19, %20 : vector<16x3xf32>
    %cst_13 = arith.constant 0.000000e+00 : f32
    %22 = vector.broadcast %cst_13 : f32 to vector<16x32xf32>
    %c0_14 = arith.constant 0 : index
    %c0_15 = arith.constant 0 : index
    %c0_16 = arith.constant 0 : index
    %23 = vector.load %arg1[%c0_14, %c0_15, %c0_16] : memref<1x16x32xbf16, #tpu.memory_space<vmem>>, vector<1x16x32xbf16>
    %24 = vector.shape_cast %23 : vector<1x16x32xbf16> to vector<16x32xbf16>
    %25 = arith.extf %24 : vector<16x32xbf16> to vector<16x32xf32>
    %26 = vector.extract_strided_slice %21 {offsets = [0, 0], sizes = [16, 1], strides = [1, 1]} : vector<16x3xf32> to vector<16x1xf32>
    %27 = vector.extract_strided_slice %2 {offsets = [0, 0, 0], sizes = [1, 1, 32], strides = [1, 1, 1]} : vector<3x1x32xf32> to vector<1x1x32xf32>
    %28 = vector.shape_cast %27 : vector<1x1x32xf32> to vector<32xf32>
    %29 = vector.shape_cast %28 : vector<32xf32> to vector<1x32xf32>
    %30 = vector.broadcast %26 : vector<16x1xf32> to vector<16x32xf32>
    %31 = vector.broadcast %29 : vector<1x32xf32> to vector<16x32xf32>
    %32 = arith.addf %30, %31 : vector<16x32xf32>
    %33 = arith.mulf %25, %32 : vector<16x32xf32>
    %34 = arith.addf %22, %33 : vector<16x32xf32>
    %35 = arith.truncf %34 : vector<16x32xf32> to vector<16x32xbf16>
    %c0_17 = arith.constant 0 : index
    %c0_18 = arith.constant 0 : index
    %c0_19 = arith.constant 0 : index
    %36 = vector.load %arg5[%c0_17, %c0_18, %c0_19] : memref<3x16x32xbf16, #tpu.memory_space<vmem>>, vector<1x16x32xbf16>
    %37 = vector.shape_cast %36 : vector<1x16x32xbf16> to vector<16x32xbf16>
    %38 = vector.shape_cast %35 : vector<16x32xbf16> to vector<1x16x32xbf16>
    tpu.vector_store %arg5[%c0_17, %c0_18, %c0_19], %38 {strides = array<i32>} : memref<3x16x32xbf16, #tpu.memory_space<vmem>>, vector<1x16x32xbf16>,
    %cst_20 = arith.constant 0.000000e+00 : f32
    %39 = vector.broadcast %cst_20 : f32 to vector<16x32xf32>
    %c0_21 = arith.constant 0 : index
    %c0_22 = arith.constant 0 : index
    %c0_23 = arith.constant 0 : index
    %40 = vector.load %arg1[%c0_21, %c0_22, %c0_23] : memref<1x16x32xbf16, #tpu.memory_space<vmem>>, vector<1x16x32xbf16>
    %41 = vector.shape_cast %40 : vector<1x16x32xbf16> to vector<16x32xbf16>
    %42 = arith.extf %41 : vector<16x32xbf16> to vector<16x32xf32>
    %43 = vector.extract_strided_slice %21 {offsets = [0, 1], sizes = [16, 1], strides = [1, 1]} : vector<16x3xf32> to vector<16x1xf32>
    %44 = vector.extract_strided_slice %2 {offsets = [1, 0, 0], sizes = [1, 1, 32], strides = [1, 1, 1]} : vector<3x1x32xf32> to vector<1x1x32xf32>
    %45 = vector.shape_cast %44 : vector<1x1x32xf32> to vector<32xf32>
    %46 = vector.shape_cast %45 : vector<32xf32> to vector<1x32xf32>
    %47 = vector.broadcast %43 : vector<16x1xf32> to vector<16x32xf32>
    %48 = vector.broadcast %46 : vector<1x32xf32> to vector<16x32xf32>
    %49 = arith.addf %47, %48 : vector<16x32xf32>
    %50 = arith.mulf %42, %49 : vector<16x32xf32>
    %51 = arith.addf %39, %50 : vector<16x32xf32>
    %52 = arith.truncf %51 : vector<16x32xf32> to vector<16x32xbf16>
    %c1 = arith.constant 1 : index
    %c0_24 = arith.constant 0 : index
    %c0_25 = arith.constant 0 : index
    %53 = vector.load %arg5[%c1, %c0_24, %c0_25] : memref<3x16x32xbf16, #tpu.memory_space<vmem>>, vector<1x16x32xbf16>
    %54 = vector.shape_cast %53 : vector<1x16x32xbf16> to vector<16x32xbf16>
    %55 = vector.shape_cast %52 : vector<16x32xbf16> to vector<1x16x32xbf16>
    tpu.vector_store %arg5[%c1, %c0_24, %c0_25], %55 {strides = array<i32>} : memref<3x16x32xbf16, #tpu.memory_space<vmem>>, vector<1x16x32xbf16>,
    %cst_26 = arith.constant 0.000000e+00 : f32
    %56 = vector.broadcast %cst_26 : f32 to vector<16x32xf32>
    %c0_27 = arith.constant 0 : index
    %c0_28 = arith.constant 0 : index
    %c0_29 = arith.constant 0 : index
    %57 = vector.load %arg1[%c0_27, %c0_28, %c0_29] : memref<1x16x32xbf16, #tpu.memory_space<vmem>>, vector<1x16x32xbf16>
    %58 = vector.shape_cast %57 : vector<1x16x32xbf16> to vector<16x32xbf16>
    %59 = arith.extf %58 : vector<16x32xbf16> to vector<16x32xf32>
    %60 = vector.extract_strided_slice %21 {offsets = [0, 2], sizes = [16, 1], strides = [1, 1]} : vector<16x3xf32> to vector<16x1xf32>
    %61 = vector.extract_strided_slice %2 {offsets = [2, 0, 0], sizes = [1, 1, 32], strides = [1, 1, 1]} : vector<3x1x32xf32> to vector<1x1x32xf32>
    %62 = vector.shape_cast %61 : vector<1x1x32xf32> to vector<32xf32>
    %63 = vector.shape_cast %62 : vector<32xf32> to vector<1x32xf32>
    %64 = vector.broadcast %60 : vector<16x1xf32> to vector<16x32xf32>
    %65 = vector.broadcast %63 : vector<1x32xf32> to vector<16x32xf32>
    %66 = arith.addf %64, %65 : vector<16x32xf32>
    %67 = arith.mulf %59, %66 : vector<16x32xf32>
    %68 = arith.addf %56, %67 : vector<16x32xf32>
    %69 = arith.truncf %68 : vector<16x32xf32> to vector<16x32xbf16>
    %c2 = arith.constant 2 : index
    %c0_30 = arith.constant 0 : index
    %c0_31 = arith.constant 0 : index
    %70 = vector.load %arg5[%c2, %c0_30, %c0_31] : memref<3x16x32xbf16, #tpu.memory_space<vmem>>, vector<1x16x32xbf16>
    %71 = vector.shape_cast %70 : vector<1x16x32xbf16> to vector<16x32xbf16>
    %72 = vector.shape_cast %69 : vector<16x32xbf16> to vector<1x16x32xbf16>
    tpu.vector_store %arg5[%c2, %c0_30, %c0_31], %72 {strides = array<i32>} : memref<3x16x32xbf16, #tpu.memory_space<vmem>>, vector<1x16x32xbf16>,
    return
  }
  func.func @transform_0(%arg0: i32) -> (i32, i32, i32) {
    %c0_i32 = arith.constant 0 : i32
    %c0_i32_0 = arith.constant 0 : i32
    %c0_i32_1 = arith.constant 0 : i32
    return %c0_i32, %arg0, %c0_i32_0 : i32, i32, i32
  }
  func.func @transform_1(%arg0: i32) -> (i32, i32) {
    %c0_i32 = arith.constant 0 : i32
    %c0_i32_0 = arith.constant 0 : i32
    %c0_i32_1 = arith.constant 0 : i32
    return %c0_i32, %c0_i32_0 : i32, i32
  }
  func.func @transform_2(%arg0: i32) -> (i32, i32) {
    %c0_i32 = arith.constant 0 : i32
    %c0_i32_0 = arith.constant 0 : i32
    %c0_i32_1 = arith.constant 0 : i32
    return %c0_i32, %c0_i32_0 : i32, i32
  }
  func.func @transform_3(%arg0: i32) -> (i32, i32, i32) {
    %c0_i32 = arith.constant 0 : i32
    %c0_i32_0 = arith.constant 0 : i32
    %c0_i32_1 = arith.constant 0 : i32
    %c0_i32_2 = arith.constant 0 : i32
    return %c0_i32, %c0_i32_0, %c0_i32_1 : i32, i32, i32
  }
  func.func @transform_4(%arg0: i32) -> (i32, i32, i32) {
    %c0_i32 = arith.constant 0 : i32
    %c0_i32_0 = arith.constant 0 : i32
    %c0_i32_1 = arith.constant 0 : i32
    return %c0_i32, %arg0, %c0_i32_0 : i32, i32, i32
  }
}

</mosaic_0001>

<bundles_post_ra>
// kernel: tpu_custom_call.1
= control target key start
LH: loop header
LB: loop body
LE: loop exit
PB: predicated region body
PF: predicated region fallthrough
CT: control target
= control target key end

     0   :  { %6 = vsyncpa [#allocation3], 0  ;;  %s340_s0 = inlined_call_operand.hbm [shape: f32[8,128], index: 0, kind: input, shape index: {}]   ;;  %s341_s1 = inlined_call_operand.hbm [shape: f32[8,128], index: 1, kind: output, shape index: {}]  }
   0x1   :  { %7 = vsyncpa [#allocation4], 0  ;;  %s261_s6 = smov 0  }
   0x2 LB: > { %s144_s7 = sadd.s32 4294967295, %s247_s6   ;;  %p145_p0 = scmp.ge.s32.totalorder %s247_s6, 1  ;;  %s247_s6 = sphi %s261_s6, %s13_s6  }
   0x3   : > { %p60_p1 = scmp.lt.s32.totalorder %s247_s6, 3  ;;  %p275_p3 = scmp.eq.s32.totalorder %s144_s7, 0 }
   0x4   : > { %s249_s10 = smov [#allocation2]   ;;  %s179_s15 = scalar_lea.hbm %s340_s0, 128 }
   0x5   : > { %p269_p2 = pnand %p145_p0, %p60_p1  ;;  %s73_s11 = sshll.u32 %s249_s10, 4  ;;  %s74_s11 = int_to_ptr.vmem [resolvable:$true] %s73_s11 }
   0x6   : > { %s346_s9 = scalar_select %p275_p3, 1, 0 }
   0x7   : > { %s345_s8 = scalar_select %p269_p2, 1, 0 }
   0x8   : > { %p161_p4 = pneg %p269_p2  ;;  %p180_p6 = scmp.ne.s32.totalorder %s340_s0, %s179_s15 }
   0x9   : > { %p186_p10 = scmp.lt.u32.totalorder %s179_s15, %s340_s0 }
   0xa   : > { %p283_p5 = pnand %p275_p3, %p161_p4 }
   0xc   : > { %p181_p7 = pneg %p283_p5 }
   0xe   : > { %p182_p8 = pnand %p181_p7, %p180_p6 }
  0x10   : > { %p183_p9 = pneg %p182_p8 }
  0x12   : > { %p188_p11 = pnand %p186_p10, %p183_p9 }
  0x14   : > { %191 = shalt.err (!%p188_p11)
}
  0x15   : > { %s192_s20 = scalar_lea.vmem %s74_s11, 128  ;;  %p200_p1 = scmp.lt.s32.totalorder %s74_s11, %s74_s11 }
  0x16   : > { %p193_p12 = scmp.ne.s32.totalorder %s74_s11, %s192_s20  ;;  %p201_p4 = scmp.lt.s32.totalorder %s192_s20, %s192_s20 }
  0x18   : > { %p195_p13 = pnand %p193_p12, %p181_p7  ;;  %p202_p3 = por %p201_p4, %p200_p1 }
  0x1a   : > { %p196_p0 = pneg %p195_p13 }
  0x1c   : > { %p203_p2 = pnand %p202_p3, %p196_p0 }
  0x1e   : > { %206 = shalt.err (!%p203_p2)
}
  0x1f   : > { %164 = dma.hbm_to_vmem [thread:$0]  (!%p283_p5), %s340_s0, 128, %s74_s11, [#allocation3]  }
  0x20   : > { %p348_p6 = scmp.ne.s32.totalorder %s345_s8, 0 }
  0x21   : > { %p349_p8 = scmp.ne.s32.totalorder (!%p348_p6), %s346_s9, 0 }
  0x22   : > { %86 = sbr.rel (%p348_p6) target bundleno = 67 (0x43), region = 24 }
  0x29   : > { %238 = dma.done.wait (%p349_p8), [#allocation3], 128  }
  0x2a   : > { %240 = vsyncadd (%p349_p8), [#allocation3], 4294967168  ;;  %s250_s23 = smov [#allocation5]   ;;  %p311_p2 = scmp.eq.s32.totalorder %s144_s7, 1  ;;  %v96_v0 = vld [vmem:[#allocation2] sm:$0xff] }
  0x2b   : > { %s105_s24 = sshll.u32 %s250_s23, 4  ;;  %97 = vst [vmem:[#allocation5] sm:$0xff] %v96_v0  ;;  %s106_s24 = int_to_ptr.vmem [resolvable:$true] %s105_s24 }
  0x2c   : > { %s207_s26 = scalar_lea.vmem %s106_s24, 128  ;;  %p214_p9 = scmp.lt.s32.totalorder %s106_s24, %s106_s24 }
  0x2d   : > { %p208_p3 = scmp.ne.s32.totalorder %s106_s24, %s207_s26  ;;  %p215_p10 = scmp.lt.s32.totalorder %s207_s26, %s207_s26 }
  0x2f   : > { %p209_p5 = pnand %p208_p3, %p311_p2  ;;  %p216_p11 = por %p215_p10, %p214_p9 }
  0x31   : > { %p210_p7 = pneg %p209_p5 }
  0x33   : > { %p217_p12 = pnand %p216_p11, %p210_p7 }
  0x35   : > { %220 = shalt.err (!%p217_p12)
}
  0x36   : > { %s221_s29 = scalar_lea.hbm %s341_s1, 128 }
  0x37   : > { %p222_p13 = scmp.ne.s32.totalorder %s341_s1, %s221_s29  ;;  %p227_p4 = scmp.lt.u32.totalorder %s221_s29, %s341_s1 }
  0x39   : > { %p223_p0 = pnand %p222_p13, %p311_p2 }
  0x3b   : > { %p224_p1 = pneg %p223_p0 }
  0x3d   : > { %p229_p6 = pnand %p227_p4, %p224_p1 }
  0x3f   : > { %232 = shalt.err (!%p229_p6)
}
  0x40   : > { %158 = dma.vmem_to_hbm [thread:$0]  (%p311_p2), %s106_s24, 128, %s341_s1, [#allocation4]  }
  0x41   : > { %242 = dma.done.wait (%p311_p2), [#allocation4], 128  }
  0x42   : > { %244 = vsyncadd (%p311_p2), [#allocation4], 4294967168 }
  0x43 PF: > { %s13_s6 = sadd.s32 1, %s247_s6  }
  0x44   : > { %p10_p8 = scmp.ge.s32.totalorder %s13_s6, 4  }
  0x46   :  { %12 = sbr.rel (!%p10_p8) target bundleno = 2 (0x2), region = 53 }
  0x4d   :  { %118 = vsyncpa [#allocation3], 1 }
  0x4e   :  { %120 = vsyncpa [#allocation3 + $0x1], 1 }
  0x4f   :  { %121 = vsyncpa [#allocation4], 1 }
  0x50   :  { %123 = vsyncpa [#allocation4 + $0x1], 1 }

// kernel: tpu_custom_call.1
= control target key start
LH: loop header
LB: loop body
LE: loop exit
PB: predicated region body
PF: predicated region fallthrough
CT: control target
= control target key end

     0   :  { %s413_s0 = inlined_call_operand.vmem [shape: bf16[1,16,32], index: 0, kind: input, shape index: {}]   ;;  %s414_s1 = inlined_call_operand.vmem [shape: f32[1,32], index: 1, kind: input, shape index: {}]   ;;  %s415_s2 = inlined_call_operand.vmem [shape: bf16[32,3], index: 2, kind: input, shape index: {}]   ;;  %s416_s3 = inlined_call_operand.vmem [shape: f32[3,1,32], index: 3, kind: input, shape index: {}]   ;;  %s417_s4 = inlined_call_operand.hbm [shape: bf16[3,16,32], index: 4, kind: output, shape index: {}]  }
   0x1   :  { %v255_v0 = vld [vmem:[%s413_s0] sm:$0xff]  }
   0x2   :  { %v358_v1 = vunpack.c.l.bf16 %v255_v0  ;;  %v360_v2 = vunpack.c.h.bf16 %v255_v0 }
   0x3   :  { %9 = vsyncpa [#allocation3], 0  ;;  %vm33_vm0 = vcmask 261120   ;;  %v292_v7 = vld [vmem:[%s415_s2] sm:$0xff]   ;;  %v322_v8 = vmov 0.0   ;;  %vm323_vm1 = vmmov 0  }
   0x4   :  { %v31_v3 = vmul.f32 %v358_v1, %v358_v1  ;;  %v32_v4 = vmul.f32 %v360_v2, %v360_v2  ;;  %269 = vmatprep.subr.bf16.mxu0 %v322_v8  ;;  %273 = vmatprep.mubr.msk.bf16.mxu0 %vm323_vm1, %v322_v8  ;;  %v293_v9 = vld [vmem:[%s415_s2 + $0x8] sm:$0xff]   ;;  %v235_v19 = vld [vmem:[%s414_s1] ss:$0 sm:$0xff]  ;;  %v324_v24 = vmov 1   ;;  %v325_v25 = vmov 0  }
   0x5   :  { %270 = vmatpush3.bf16.msra.mxu0 %v292_v7  ;;  %286 = vset.pattern.permute.xlu0 %v324_v24  ;;  %v326_v31 = vmov 2   ;;  %v242_v33 = vld [vmem:[%s416_s3 + $0x1] ss:$0 sm:$0xff]  ;;  %v239_v34 = vld [vmem:[%s416_s3] ss:$0 sm:$0xff]  ;;  %vm146_vm2 = vcmask 257024  }
   0x6   :  { %v34_v5 = vsel %vm33_vm0, %v31_v3, 0.0  ;;  %v37_v6 = vsel %vm33_vm0, %v32_v4, 0.0  ;;  %271 = vmatprep.subr.bf16.mxu0 %v322_v8  ;;  %285 = vset.pattern.permute.xlu1 %v325_v25  ;;  %v245_v41 = vld [vmem:[%s416_s3 + $0x2] ss:$0 sm:$0xff]  ;;  %s327_s3 = smov [#allocation2]  }
   0x7   :  { %35 = vadd.xlane.f32.xlu0 %v34_v5  ;;  %s224_s26 = sshll.u32 %s327_s3, 4  ;;  %s225_s26 = int_to_ptr.vmem [resolvable:$true] %s224_s26 }
   0x8   :  { %s298_s27 = scalar_lea.vmem %s225_s26, 384  ;;  %p303_p1 = scmp.lt.s32.totalorder %s225_s26, %s225_s26 }
   0x9   :  { %272 = vmatpush3.bf16.msra.mxu0 %v293_v9  ;;  %p299_p0 = scmp.ne.s32.totalorder %s225_s26, %s298_s27  ;;  %p304_p2 = scmp.lt.s32.totalorder %s298_s27, %s298_s27 }
   0xb   :  { %38 = vadd.xlane.f32.xlu0 %v37_v6  ;;  %p305_p3 = por %p304_p2, %p303_p1 }
   0xd   :  { %p306_p4 = pnand %p305_p3, %p299_p0 }
  0x94   :  { %v36_v10 = vpop.xlane.xlu0 %35 }
  0x95   :  { %v41_v11 = vmul.f32 0.03125, %v36_v10 }
  0x97   :  { %v43_v12 = vadd.f32 1.1920929e-07, %v41_v11 }
  0x98   :  { %v39_v13 = vpop.xlane.xlu0 %38 }
  0x99   :  { %294 = vrsqrt.f32 %v43_v12  ;;  %v42_v14 = vmul.f32 0.03125, %v39_v13 }
  0x9b   :  { %v44_v15 = vadd.f32 1.1920929e-07, %v42_v14 }
  0x9d   :  { %296 = vrsqrt.f32 %v44_v15 }
  0xa3   :  { %v295_v16 = vpop.eup %294 }
  0xa4   :  { %v47_v17 = vmul.f32 %v295_v16, %v358_v1 }
  0xa6   :  { %v55_v21 = vmul.f32 %v235_v19, %v47_v17 }
  0xa7   :  { %v297_v18 = vpop.eup %296 }
  0xa8   :  { %v48_v20 = vmul.f32 %v297_v18, %v360_v2 }
  0xaa   :  { %v56_v22 = vmul.f32 %v235_v19, %v48_v20 }
  0xac   :  { %v57_v23 = vpack.c.bf16 %v56_v22, %v55_v21 }
  0xae   :  { %274 = vmatmul.mubr.msk.bf16.vlgmr.msra.gmra.mrb[0].mxu0 %vm33_vm0, %v57_v23 }
 0x181   :  { %v107_v26 = vpop.f32.mrb[0].mxu0 }
 0x182   :  { %v114_v27 = vmax.f32 %v107_v26, 0.0  ;;  %v275_v28 = vpop.f32.mrb[1].mxu0 }
 0x183   :  { %v110_v29 = vpop.f32.mrb[2].mxu0 }
 0x184   :  { %154 = vperm.xlu0 %286, %v114_v27   ;;  %118 = vperm.xlu1 %285, %v114_v27   ;;  %v276_v30 = vpop.f32.mrb[3].mxu0  ;;  %v115_v32 = vmax.f32 %v110_v29, 0.0 }
 0x188   :  { %287 = vset.pattern.permute.xlu1 %v326_v31  ;;  %291 = vset.pattern.permute.xlu0 %v326_v31 }
 0x189   :  { %189 = vperm.xlu1 %287, %v114_v27  }
 0x18d   :  { %288 = vset.pattern.permute.xlu1 %v325_v25 }
 0x18e   :  { %123 = vperm.xlu1 %288, %v115_v32  }
 0x192   :  { %289 = vset.pattern.permute.xlu1 %v324_v24 }
 0x193   :  { %158 = vperm.xlu1 %289, %v115_v32  }
 0x197   :  { %290 = vset.pattern.permute.xlu1 %v326_v31 }
 0x198   :  { %193 = vperm.xlu1 %290, %v115_v32  }
 0x203   :  { %v155_v35 = vpop.permute.xlu0 %154  ;;  %v119_v36 = vpop.permute.xlu1 %118 }
 0x204   :  { %v167_v37 = vadd.f32 %v242_v33, %v155_v35  ;;  %v132_v38 = vadd.f32 %v239_v34, %v119_v36 }
 0x206   :  { %v169_v39 = vmul.f32 %v358_v1, %v167_v37  ;;  %v134_v40 = vmul.f32 %v358_v1, %v132_v38 }
 0x208   :  { %v250_v42 = vpack.c.bf16 %v169_v39, %v169_v39  ;;  %v248_v43 = vpack.c.bf16 %v134_v40, %v134_v40  ;;  %v190_v44 = vpop.permute.xlu1 %189 }
 0x209   :  { %v202_v45 = vadd.f32 %v245_v41, %v190_v44 }
 0x20a   :  { %182 = vst.msk [vmem:[#allocation2 + $0x8] sm:$0xf] %vm146_vm2, %v250_v42  ;;  %147 = vst.msk [vmem:[#allocation2] sm:$0xf] %vm146_vm2, %v248_v43 }
 0x20b   :  { %v204_v46 = vmul.f32 %v358_v1, %v202_v45 }
 0x20d   :  { %v252_v47 = vpack.c.bf16 %v204_v46, %v204_v46  ;;  %v124_v48 = vpop.permute.xlu1 %123 }
 0x20e   :  { %v133_v49 = vadd.f32 %v239_v34, %v124_v48 }
 0x20f   :  { %217 = vst.msk [vmem:[#allocation2 + $0x10] sm:$0xf] %vm146_vm2, %v252_v47 }
 0x210   :  { %v135_v50 = vmul.f32 %v360_v2, %v133_v49 }
 0x212   :  { %v249_v51 = vpack.c.bf16 %v135_v50, %v135_v50  ;;  %v159_v52 = vpop.permute.xlu1 %158 }
 0x213   :  { %v168_v53 = vadd.f32 %v242_v33, %v159_v52 }
 0x214   :  { %148 = vst.msk [vmem:[#allocation2 + $0x4] sm:$0xf] %vm146_vm2, %v249_v51 }
 0x215   :  { %v170_v54 = vmul.f32 %v360_v2, %v168_v53 }
 0x217   :  { %v251_v55 = vpack.c.bf16 %v170_v54, %v170_v54  ;;  %v194_v56 = vpop.permute.xlu1 %193 }
 0x218   :  { %v203_v57 = vadd.f32 %v245_v41, %v194_v56 }
 0x219   :  { %183 = vst.msk [vmem:[#allocation2 + $0xc] sm:$0xf] %vm146_vm2, %v251_v55 }
 0x21a   :  { %v205_v58 = vmul.f32 %v360_v2, %v203_v57 }
 0x21c   :  { %v253_v59 = vpack.c.bf16 %v205_v58, %v205_v58 }
 0x21e   :  { %218 = vst.msk [vmem:[#allocation2 + $0x14] sm:$0xf] %vm146_vm2, %v253_v59 }
 0x21f   :  { %309 = shalt.err (!%p306_p4)
}
 0x220   :  { %s310_s30 = scalar_lea.hbm %s417_s4, 384 }
 0x221   :  { %p311_p5 = scmp.ne.s32.totalorder %s417_s4, %s310_s30  ;;  %p314_p6 = scmp.lt.u32.totalorder %s310_s30, %s417_s4 }
 0x223   :  { %p316_p7 = pnand %p314_p6, %p311_p5 }
 0x225   :  { %319 = shalt.err (!%p316_p7)
}
 0x226   :  { %s328_s9 = smov 64   ;;  %s329_s10 = smov 4  }
 0x227   :  { %230 = dma.vmem_to_hbm [thread:$0]  %s225_s26, 384, %s417_s4, [#allocation3], %s328_s9, %s328_s9, %s329_s10  }
 0x228   :  { %320 = dma.done.wait [#allocation3], 384  }
 0x229   :  { %321 = vsyncadd [#allocation3], 4294966912 }
 0x22a   :  { %234 = vsyncpa [#allocation3], 1 }

</bundles_post_ra>
